<compile_context>
chip_gen: v7x
topology: tpu7x:2x2x1
jax: 0.10.0
libtpu: 0.0.40
codegen_flags: <defaults>
</compile_context>

<pallas_src>
import functools

import jax
import jax.numpy as jnp
from jax import lax
from jax.experimental import pallas as pl
from jax.experimental.pallas import tpu as pltpu


def _round_up(x, m):
    return (x + m - 1) // m * m


def _cdiv(a, b):
    return (a + b - 1) // b


def _vmem_capacity_bytes():
    """Trace-time query of per-core VMEM capacity; conservative fallback."""
    try:
        info = pltpu.get_tpu_info()
        cap = getattr(info, "vmem_capacity_bytes", None)
        if cap:
            return int(cap)
    except Exception:
        pass
    return 64 * 1024 * 1024  # v7x-sized (smallest current generation)


def _recon_loss_kernel(pred_ref, gt_ref, out_ref, acc_ref, *, scale):
    """Accumulate sum(|gt - pred|) over a (TB, W) tile of the packed block stream.

    Grid = (ncores, steps): axis 0 is a 'parallel' core-split, axis 1 streams
    row-batches. Each core keeps its own (8, W) accumulator and writes its scaled
    partial to its own aligned (8, 128) output block in the final step.
    """
    step = pl.program_id(1)

    @pl.when(step == 0)
    def _():
        acc_ref[...] = jnp.zeros_like(acc_ref)

    tb = pred_ref.shape[0]

    def chunk_body(k, carry):
        # 8-row chunks: the |diff| intermediate never exceeds a handful of vregs,
        # upcast to f32 before the cancellation-sensitive subtraction.
        r = pl.multiple_of(k * 8, 8)
        p = pred_ref[pl.ds(r, 8), :].astype(jnp.float32)
        g = gt_ref[pl.ds(r, 8), :].astype(jnp.float32)
        acc_ref[...] += jnp.abs(g - p)
        return carry

    lax.fori_loop(0, tb // 8, chunk_body, 0)

    @pl.when(step == pl.num_programs(1) - 1)
    def _():
        # One cross-lane/sublane reduce + one scale multiply + one full-vreg store.
        partial = jnp.sum(acc_ref[...]) * jnp.float32(scale)
        out_ref[...] = jnp.broadcast_to(partial, out_ref.shape).astype(out_ref.dtype)


def _gather_masked_blocks(x, masked_indices, block_size):
    """Gather only the masked blocks -> (num_idx, C*bs^3). No full-tensor transpose."""
    n, c, z, y, xx = x.shape
    bs = block_size
    zb, yb, xb = z // bs, y // bs, xx // bs
    xv = x.reshape(n, c, zb, bs, yb, bs, xb, bs)
    s_ids = jnp.asarray([m[0] for m in masked_indices], dtype=jnp.int32)
    bz = jnp.asarray([m[2] for m in masked_indices], dtype=jnp.int32)
    by = jnp.asarray([m[3] for m in masked_indices], dtype=jnp.int32)
    bx = jnp.asarray([m[4] for m in masked_indices], dtype=jnp.int32)
    blocks = xv[s_ids, :, bz, :, by, :, bx, :]  # (num_idx, C, bs, bs, bs)
    return blocks.reshape(len(masked_indices), c * bs * bs * bs)


def _pack_flat(x, masked_indices, block_size, rows_pad, w, total):
    """Gather masked blocks and write them (one fused copy) into a pre-zeroed
    lane-dense (rows_pad, w) slab. Trailing zeros contribute 0 to the L1 sum."""
    flat = _gather_masked_blocks(x, masked_indices, block_size).reshape(-1)
    buf = jnp.zeros((rows_pad * w,), dtype=x.dtype)
    buf = buf.at[:total].set(flat)
    return buf.reshape(rows_pad, w)


def reconstruction_loss(masked_tensor, original_tensor, masked_indices, block_size,
                        *, max_rows_per_step=None, row_width=None):
    """Pallas equivalent of ReconstructionLoss.forward.

    masked_tensor / original_tensor: (N, C, Z, Y, X)
    masked_indices: list of (sample_idx, _, block_z, block_y, block_x)
    """
    if len(masked_indices) == 0:
        return jnp.float32(0.0)

    num_idx = len(masked_indices)
    c = masked_tensor.shape[1]
    d = c * block_size ** 3          # true elements per block
    total = num_idx * d              # true elements in the masked stream
    itemsize = masked_tensor.dtype.itemsize

    # Lane-dense packed-row width (multiple of 128); small inputs get narrow rows.
    if row_width is None:
        w = min(2048, max(128, _round_up(_cdiv(total, 8), 128)))
    else:
        assert row_width % 128 == 0, "row_width must be a multiple of 128"
        w = int(row_width)

    # Generation-aware tile budget (per input buffer) and scoped-VMEM limit.
    vmem_cap = _vmem_capacity_bytes()
    per_input_budget = min(12 << 20, max(4 << 20, vmem_cap // 10))
    vmem_limit = int(max(32 << 20, min((vmem_cap * 3) // 4, 96 << 20)))

    tb_cap = max(8, (per_input_budget // (w * itemsize)) // 8 * 8)
    if max_rows_per_step is not None:
        tb_cap = max(8, min(tb_cap, _round_up(int(max_rows_per_step), 8)))

    # Balanced tiling: padding is bounded by ~8 rows per grid step (not tb-1 rows).
    rows = _cdiv(total, w)
    ncores = 2 if rows >= 16 else 1          # 2-TC split on v7x; harmless on v5e/v6e
    steps = _cdiv(_cdiv(rows, ncores), tb_cap)
    tb = _round_up(_cdiv(rows, ncores * steps), 8)
    rows_pad = ncores * steps * tb

    pred_rows = _pack_flat(masked_tensor, masked_indices, block_size, rows_pad, w, total)
    gt_rows = _pack_flat(original_tensor, masked_indices, block_size, rows_pad, w, total)

    scale = 1.0 / (float(d) * float(num_idx))  # hoisted: single multiply at the end
    kernel = functools.partial(_recon_loss_kernel, scale=scale)

    def row_block(ci, si):
        return (ci * steps + si, 0)

    cost = pl.CostEstimate(
        flops=3 * rows_pad * w,
        transcendentals=0,
        bytes_accessed=2 * rows_pad * w * itemsize + 8 * 128 * ncores * 4,
    )

    out = pl.pallas_call(
        kernel,
        out_shape=jax.ShapeDtypeStruct((8, 128 * ncores), jnp.float32),
        grid_spec=pltpu.PrefetchScalarGridSpec(
            num_scalar_prefetch=0,
            grid=(ncores, steps),
            in_specs=[
                pl.BlockSpec((tb, w), row_block),
                pl.BlockSpec((tb, w), row_block),
            ],
            out_specs=pl.BlockSpec((8, 128), lambda ci, si: (0, ci)),
            scratch_shapes=[pltpu.VMEM((8, w), jnp.float32)],
        ),
        compiler_params=pltpu.CompilerParams(
            dimension_semantics=("parallel", "arbitrary"),
            vmem_limit_bytes=vmem_limit,
        ),
        cost_estimate=cost,
    )(pred_rows, gt_rows)

    # Sum the per-core partials (already scaled); element [0, ci*128] per core.
    return jnp.sum(out.reshape(8, ncores, 128)[0, :, 0])


def _reference(masked_tensor, original_tensor, masked_indices, block_size):
    """Pure-JAX reference matching the PyTorch module."""
    if len(masked_indices) == 0:
        return jnp.float32(0.0)
    total = 0.0
    bs = block_size
    for (s, _, bz, by, bx) in masked_indices:
        z, y, x = bz * bs, by * bs, bx * bs
        gt = original_tensor[s, :, z:z + bs, y:y + bs, x:x + bs]
        pr = masked_tensor[s, :, z:z + bs, y:y + bs, x:x + bs]
        total += jnp.mean(jnp.abs(gt - pr))
    return total / len(masked_indices)


if __name__ == "__main__":
    key = jax.random.PRNGKey(0)
    k1, k2, k3, k4 = jax.random.split(key, 4)

    N, C, Z, Y, X = 2, 4, 16, 16, 16
    block_size = 8

    original = jax.random.normal(k1, (N, C, Z, Y, X), dtype=jnp.float32)
    masked = original + 0.1 * jax.random.normal(k2, (N, C, Z, Y, X), dtype=jnp.float32)

    # (sample_idx, channel_ignored, block_z, block_y, block_x)
    masked_indices = [
        (0, 0, 0, 0, 0),
        (0, 0, 1, 0, 1),
        (1, 0, 0, 1, 0),
        (1, 0, 1, 1, 1),
    ]

    loss = reconstruction_loss(masked, original, masked_indices, block_size)
    loss = jax.block_until_ready(loss)
    ref = _reference(masked, original, masked_indices, block_size)
    assert jnp.allclose(loss, ref, rtol=1e-4, atol=1e-6), (loss, ref)

    # All blocks masked; narrow rows + tiny tb forces grid=(2 cores, 4 steps) to
    # exercise the parallel core axis, per-core accumulator init, and multi-step
    # streaming with zero padding waste (rows_pad == rows).
    all_indices = [(s, 0, bz, by, bx)
                   for s in range(N) for bz in range(2) for by in range(2) for bx in range(2)]
    loss2 = reconstruction_loss(masked, original, all_indices, block_size,
                                max_rows_per_step=8, row_width=512)
    loss2 = jax.block_until_ready(loss2)
    ref2 = _reference(masked, original, all_indices, block_size)
    assert jnp.allclose(loss2, ref2, rtol=1e-4, atol=1e-6), (loss2, ref2)

    # d = C*bs^3 = 192 (not a multiple of 128): exercises the flat lane-dense
    # packing with a zero-padded tail instead of per-row lane padding.
    orig_b = jax.random.normal(k3, (2, 3, 8, 8, 8), dtype=jnp.float32)
    mask_b = orig_b + 0.05 * jax.random.normal(k4, (2, 3, 8, 8, 8), dtype=jnp.float32)
    idx_b = [(0, 0, 0, 0, 0), (0, 0, 1, 1, 1), (1, 0, 0, 1, 0),
             (1, 0, 1, 0, 1), (1, 0, 1, 1, 0)]
    loss3 = reconstruction_loss(mask_b, orig_b, idx_b, 4)
    loss3 = jax.block_until_ready(loss3)
    ref3 = _reference(mask_b, orig_b, idx_b, 4)
    assert jnp.allclose(loss3, ref3, rtol=1e-4, atol=1e-6), (loss3, ref3)

    # Empty-mask path returns a float32 scalar consistent with the kernel path.
    empty = reconstruction_loss(masked, original, [], block_size)
    assert float(empty) == 0.0 and empty.dtype == jnp.float32

    print("KERNEL_OK")
</pallas_src>

<mosaic_0001>
module attributes {stable_mosaic.version = 11 : i64} {
  func.func @_recon_loss_kernel(%arg0: i32, %arg1: i32, %arg2: memref<8x1024xf32, #tpu.memory_space<vmem>>, %arg3: memref<8x1024xf32, #tpu.memory_space<vmem>>, %arg4: memref<8x128xf32, #tpu.memory_space<vmem>>, %arg5: memref<8x1024xf32, #tpu.memory_space<vmem>>) attributes {dimension_semantics = [#tpu.dimension_semantics<parallel>, #tpu.dimension_semantics<arbitrary>], iteration_bounds = array<i64: 1, 1>, scalar_prefetch = 0 : i64, scratch_operands = 1 : i64, tpu.core_type = #tpu.core_type<tc>, window_params = [{transform_indices = @transform_0, window_bounds = array<i64: 8, 1024>}, {transform_indices = @transform_1, window_bounds = array<i64: 8, 1024>}, {transform_indices = @transform_2, window_bounds = array<i64: 8, 128>}]} {
    %c0_i32 = arith.constant 0 : i32
    %0 = arith.cmpi eq, %arg1, %c0_i32 : i32
    %1 = arith.extui %0 : i1 to i32
    %c0_i32_0 = arith.constant 0 : i32
    %2 = arith.cmpi ne, %1, %c0_i32_0 : i32
    scf.if %2 {
      %cst = arith.constant 0.000000e+00 : f32
      %17 = vector.broadcast %cst : f32 to vector<8x1024xf32>
      %c0_9 = arith.constant 0 : index
      %c0_10 = arith.constant 0 : index
      %18 = vector.load %arg5[%c0_9, %c0_10] : memref<8x1024xf32, #tpu.memory_space<vmem>>, vector<8x1024xf32>
      tpu.vector_store %arg5[%c0_9, %c0_10], %17 {strides = array<i32>} : memref<8x1024xf32, #tpu.memory_space<vmem>>, vector<8x1024xf32>,
    } else {
    }
    %c0_i32_1 = arith.constant 0 : i32
    %c8_i32 = arith.constant 8 : i32
    %3 = arith.muli %c0_i32_1, %c8_i32 : i32
    %4 = tpu.assume_multiple %3, 8 : i32
    %5 = arith.index_cast %4 : i32 to index
    %c0 = arith.constant 0 : index
    %6 = vector.load %arg2[%5, %c0] : memref<8x1024xf32, #tpu.memory_space<vmem>>, vector<8x1024xf32>
    %7 = arith.index_cast %4 : i32 to index
    %c0_2 = arith.constant 0 : index
    %8 = vector.load %arg3[%7, %c0_2] : memref<8x1024xf32, #tpu.memory_space<vmem>>, vector<8x1024xf32>
    %c0_3 = arith.constant 0 : index
    %c0_4 = arith.constant 0 : index
    %9 = vector.load %arg5[%c0_3, %c0_4] : memref<8x1024xf32, #tpu.memory_space<vmem>>, vector<8x1024xf32>
    %10 = arith.subf %8, %6 : vector<8x1024xf32>
    %11 = math.absf %10 : vector<8x1024xf32>
    %12 = arith.addf %9, %11 : vector<8x1024xf32>
    %c0_5 = arith.constant 0 : index
    %c0_6 = arith.constant 0 : index
    %13 = vector.load %arg5[%c0_5, %c0_6] : memref<8x1024xf32, #tpu.memory_space<vmem>>, vector<8x1024xf32>
    tpu.vector_store %arg5[%c0_5, %c0_6], %12 {strides = array<i32>} : memref<8x1024xf32, #tpu.memory_space<vmem>>, vector<8x1024xf32>,
    %c1_i32 = arith.constant 1 : i32
    %c0_i32_7 = arith.constant 0 : i32
    %14 = arith.cmpi eq, %arg1, %c0_i32_7 : i32
    %15 = arith.extui %14 : i1 to i32
    %c0_i32_8 = arith.constant 0 : i32
    %16 = arith.cmpi ne, %15, %c0_i32_8 : i32
    scf.if %16 {
      %c0_9 = arith.constant 0 : index
      %c0_10 = arith.constant 0 : index
      %17 = vector.load %arg5[%c0_9, %c0_10] : memref<8x1024xf32, #tpu.memory_space<vmem>>, vector<8x1024xf32>
      %18 = vector.shape_cast %17 : vector<8x1024xf32> to vector<1x8x1024xf32>
      %cst = arith.constant dense<0.000000e+00> : vector<1xf32>
      %19 = vector.multi_reduction <add>, %18, %cst [1, 2] : vector<1x8x1024xf32> to vector<1xf32>
      %20 = vector.shape_cast %19 : vector<1xf32> to vector<1x1x1xf32>
      %21 = vector.extract %20[0, 0, 0] : f32 from vector<1x1x1xf32>
      %cst_11 = arith.constant 1.22070313E-4 : f32
      %22 = arith.mulf %21, %cst_11 : f32
      %23 = vector.broadcast %22 : f32 to vector<8x128xf32>
      %c0_12 = arith.constant 0 : index
      %c0_13 = arith.constant 0 : index
      %24 = vector.load %arg4[%c0_12, %c0_13] : memref<8x128xf32, #tpu.memory_space<vmem>>, vector<8x128xf32>
      tpu.vector_store %arg4[%c0_12, %c0_13], %23 {strides = array<i32>} : memref<8x128xf32, #tpu.memory_space<vmem>>, vector<8x128xf32>,
    } else {
    }
    return
  }
  func.func @transform_0(%arg0: i32, %arg1: i32) -> (i32, i32) {
    %c1_i32 = arith.constant 1 : i32
    %0 = arith.muli %arg0, %c1_i32 : i32
    %1 = arith.addi %0, %arg1 : i32
    %c0_i32 = arith.constant 0 : i32
    %c0_i32_0 = arith.constant 0 : i32
    return %1, %c0_i32 : i32, i32
  }
  func.func @transform_1(%arg0: i32, %arg1: i32) -> (i32, i32) {
    %c1_i32 = arith.constant 1 : i32
    %0 = arith.muli %arg0, %c1_i32 : i32
    %1 = arith.addi %0, %arg1 : i32
    %c0_i32 = arith.constant 0 : i32
    %c0_i32_0 = arith.constant 0 : i32
    return %1, %c0_i32 : i32, i32
  }
  func.func @transform_2(%arg0: i32, %arg1: i32) -> (i32, i32) {
    %c0_i32 = arith.constant 0 : i32
    %c0_i32_0 = arith.constant 0 : i32
    return %c0_i32, %arg0 : i32, i32
  }
}

</mosaic_0001>

<bundles_post_ra>
// kernel: tpu_custom_call.1
= control target key start
LH: loop header
LB: loop body
LE: loop exit
PB: predicated region body
PF: predicated region fallthrough
CT: control target
= control target key end

     0   :  { %7 = vsyncpa [#allocation4], 0  ;;  %s296_s0 = inlined_call_operand.hbm [shape: f32[8,1024], index: 0, kind: input, shape index: {}]   ;;  %s297_s1 = inlined_call_operand.hbm [shape: f32[8,1024], index: 1, kind: input, shape index: {}]   ;;  %s298_s2 = inlined_call_operand.hbm [shape: f32[8,128], index: 2, kind: output, shape index: {}]  }
   0x1   :  { %8 = vsyncpa [#allocation7], 0 }
   0x2   :  { %9 = vsyncpa [#allocation5], 0  ;;  %s242_s9 = smov [#allocation3]   ;;  %s243_s11 = smov [#allocation6]  }
   0x3   :  { %s20_s10 = sshll.u32 %s242_s9, 4  ;;  %s34_s12 = sshll.u32 %s243_s11, 4  ;;  %s21_s10 = int_to_ptr.vmem [resolvable:$true] %s20_s10  ;;  %s35_s12 = int_to_ptr.vmem [resolvable:$true] %s34_s12 }
   0x4   :  { %s170_s15 = scalar_lea.hbm %s296_s0, 1024 }
   0x5   :  { %p171_p0 = scmp.ne.s32.totalorder %s296_s0, %s170_s15  ;;  %p174_p1 = scmp.lt.u32.totalorder %s170_s15, %s296_s0 }
   0x7   :  { %p176_p2 = pnand %p174_p1, %p171_p0 }
   0x9   :  { %179 = shalt.err (!%p176_p2)
}
   0xa   :  { %s180_s20 = scalar_lea.vmem %s21_s10, 1024  ;;  %p185_p4 = scmp.lt.s32.totalorder %s21_s10, %s21_s10 }
   0xb   :  { %p181_p3 = scmp.ne.s32.totalorder %s21_s10, %s180_s20  ;;  %p186_p5 = scmp.lt.s32.totalorder %s180_s20, %s180_s20 }
   0xd   :  { %p187_p6 = por %p186_p5, %p185_p4 }
   0xf   :  { %p188_p7 = pnand %p187_p6, %p181_p3 }
  0x11   :  { %191 = shalt.err (!%p188_p7)
}
  0x12   :  { %23 = dma.hbm_to_vmem [thread:$0]  %s296_s0, 1024, %s21_s10, [#allocation4]  }
  0x13   :  { %s192_s25 = scalar_lea.hbm %s297_s1, 1024 }
  0x14   :  { %p193_p8 = scmp.ne.s32.totalorder %s297_s1, %s192_s25  ;;  %p196_p9 = scmp.lt.u32.totalorder %s192_s25, %s297_s1 }
  0x16   :  { %p198_p10 = pnand %p196_p9, %p193_p8 }
  0x18   :  { %201 = shalt.err (!%p198_p10)
}
  0x19   :  { %s202_s30 = scalar_lea.vmem %s35_s12, 1024  ;;  %p207_p12 = scmp.lt.s32.totalorder %s35_s12, %s35_s12 }
  0x1a   :  { %p203_p11 = scmp.ne.s32.totalorder %s35_s12, %s202_s30  ;;  %p208_p13 = scmp.lt.s32.totalorder %s202_s30, %s202_s30 }
  0x1c   :  { %p209_p0 = por %p208_p13, %p207_p12 }
  0x1e   :  { %p210_p1 = pnand %p209_p0, %p203_p11 }
  0x20   :  { %213 = shalt.err (!%p210_p1)
}
  0x21   :  { %37 = dma.hbm_to_vmem [thread:$0]  %s297_s1, 1024, %s35_s12, [#allocation7]  }
  0x22   :  { %236 = dma.done.wait [#allocation4], 1024  }
  0x23   :  { %237 = vsyncadd [#allocation4], 4294966272 }
  0x24   :  { %238 = dma.done.wait [#allocation7], 1024  }
  0x25   :  { %239 = vsyncadd [#allocation7], 4294966272  ;;  %v61_v0 = vld [vmem:[#allocation3] sm:$0xff]  ;;  %v62_v1 = vld [vmem:[#allocation3 + $0x8] sm:$0xff]  ;;  %s244_s1 = smov [#allocation8]  }
  0x26   :  { %v63_v2 = vld [vmem:[#allocation3 + $0x10] sm:$0xff]  ;;  %v64_v3 = vld [vmem:[#allocation3 + $0x18] sm:$0xff]  ;;  %v65_v4 = vld [vmem:[#allocation3 + $0x20] sm:$0xff]  ;;  %s155_s4 = sshll.u32 %s244_s1, 4  ;;  %s156_s4 = int_to_ptr.vmem [resolvable:$true] %s155_s4 }
  0x27   :  { %v71_v5 = vld [vmem:[#allocation6] sm:$0xff]  ;;  %v72_v6 = vld [vmem:[#allocation6 + $0x8] sm:$0xff]  ;;  %v73_v7 = vld [vmem:[#allocation6 + $0x10] sm:$0xff]  ;;  %s214_s7 = scalar_lea.vmem %s156_s4, 128  ;;  %p219_p3 = scmp.lt.s32.totalorder %s156_s4, %s156_s4 }
  0x28   :  { %v74_v8 = vld [vmem:[#allocation6 + $0x18] sm:$0xff]  ;;  %v87_v9 = vsub.f32 %v71_v5, %v61_v0  ;;  %v75_v10 = vld [vmem:[#allocation6 + $0x20] sm:$0xff]  ;;  %v88_v11 = vsub.f32 %v72_v6, %v62_v1  ;;  %v89_v12 = vsub.f32 %v73_v7, %v63_v2  ;;  %v66_v14 = vld [vmem:[#allocation3 + $0x28] sm:$0xff]  ;;  %p215_p2 = scmp.ne.s32.totalorder %s156_s4, %s214_s7  ;;  %p220_p4 = scmp.lt.s32.totalorder %s214_s7, %s214_s7 }
  0x29   :  { %v90_v13 = vsub.f32 %v74_v8, %v64_v3  ;;  %v76_v15 = vld [vmem:[#allocation6 + $0x28] sm:$0xff]  ;;  %v91_v17 = vsub.f32 %v75_v10, %v65_v4  ;;  %v67_v20 = vld [vmem:[#allocation3 + $0x30] sm:$0xff]  ;;  %v68_v25 = vld [vmem:[#allocation3 + $0x38] sm:$0xff] }
  0x2a   :  { %v95_v16 = vand.u32 2147483647, %v87_v9  ;;  %v96_v18 = vand.u32 2147483647, %v88_v11  ;;  %v97_v19 = vand.u32 2147483647, %v89_v12  ;;  %v92_v22 = vsub.f32 %v76_v15, %v66_v14  ;;  %p221_p5 = por %p220_p4, %p219_p3 }
  0x2b   :  { %v77_v21 = vld [vmem:[#allocation6 + $0x30] sm:$0xff]  ;;  %v98_v23 = vand.u32 2147483647, %v90_v13  ;;  %v78_v26 = vld [vmem:[#allocation6 + $0x38] sm:$0xff]  ;;  %v99_v28 = vand.u32 2147483647, %v91_v17 }
  0x2c   :  { %v130_v24 = vadd.f32 %v96_v18, %v95_v16  ;;  %v93_v27 = vsub.f32 %v77_v21, %v67_v20  ;;  %v94_v30 = vsub.f32 %v78_v26, %v68_v25  ;;  %v100_v31 = vand.u32 2147483647, %v92_v22  ;;  %p222_p6 = pnand %p221_p5, %p215_p2 }
  0x2e   :  { %v131_v29 = vadd.f32 %v130_v24, %v97_v19  ;;  %v101_v33 = vand.u32 2147483647, %v93_v27  ;;  %v102_v35 = vand.u32 2147483647, %v94_v30 }
  0x30   :  { %v132_v32 = vadd.f32 %v131_v29, %v98_v23 }
  0x32   :  { %v133_v34 = vadd.f32 %v132_v32, %v99_v28 }
  0x34   :  { %v134_v36 = vadd.f32 %v133_v34, %v100_v31 }
  0x36   :  { %v135_v37 = vadd.f32 %v134_v36, %v101_v33 }
  0x38   :  { %v136_v38 = vadd.f32 %v135_v37, %v102_v35 }
  0x3a   :  { %137 = vadd.xlane.f32.xlu0 %v136_v38 }
  0xc7   :  { %v138_v39 = vpop.xlane.xlu0 %137 }
  0xc8   :  { %v139_v40 = vrot.slane %v138_v39, 4 }
  0xca   :  { %v140_v41 = vadd.f32 %v139_v40, %v138_v39 }
  0xcc   :  { %v141_v42 = vrot.slane %v140_v41, 2 }
  0xce   :  { %v142_v43 = vadd.f32 %v141_v42, %v140_v41 }
  0xd0   :  { %v143_v44 = vrot.slane %v142_v43, 1 }
  0xd2   :  { %v144_v45 = vadd.f32 %v143_v44, %v142_v43 }
  0xd4   :  { %165 = vpush %v144_v45 }
 0x105   :  { %s166_s5 = spop %165 }
 0x106   :  { %s146_s6 = smul.f32 0.00012207031, %s166_s5 }
 0x108   :  { %v147_v46 = vstv %s146_s6 }
 0x109   :  { %148 = vst [vmem:[#allocation8] sm:$0xff] %v147_v46 }
 0x10a   :  { %225 = shalt.err (!%p222_p6)
}
 0x10b   :  { %s226_s10 = scalar_lea.hbm %s298_s2, 128 }
 0x10c   :  { %p227_p7 = scmp.ne.s32.totalorder %s298_s2, %s226_s10  ;;  %p230_p8 = scmp.lt.u32.totalorder %s226_s10, %s298_s2 }
 0x10e   :  { %p232_p9 = pnand %p230_p8, %p227_p7 }
 0x110   :  { %235 = shalt.err (!%p232_p9)
}
 0x111   :  { %158 = dma.vmem_to_hbm [thread:$0]  %s156_s4, 128, %s298_s2, [#allocation5]  }
 0x112   :  { %240 = dma.done.wait [#allocation5], 128  }
 0x113   :  { %241 = vsyncadd [#allocation5], 4294967168 }
 0x114   :  { %162 = vsyncpa [#allocation4], 1 }
 0x115   :  { %163 = vsyncpa [#allocation7], 1 }
 0x116   :  { %164 = vsyncpa [#allocation5], 1 }

</bundles_post_ra>
